<compile_context>
chip_gen: v6e
topology: v6e:2x2x1
jax: 0.10.0
libtpu: 0.0.40
codegen_flags: <defaults>
</compile_context>

<pallas_src>
import math

import jax
import jax.numpy as jnp
from jax.experimental import pallas as pl
from jax.experimental.pallas import tpu as pltpu


# ---------------------------------------------------------------------------
# Kernel: lane-dense broadcast add (compute in f32 for parity with torch's
# float32 PE buffer, cast back to the output dtype).
#   x_ref : (TR, TC) tile of the flattened input
#   pe_ref: (1,  TC) positional-encoding chunk (resident across inner axis)
#   o_ref : (TR, TC) output tile
# ---------------------------------------------------------------------------
def _pe_add_kernel(x_ref, pe_ref, o_ref):
    o_ref[...] = (x_ref[...].astype(jnp.float32) + pe_ref[...]).astype(o_ref.dtype)


def build_pe_table(max_len: int, d_model: int) -> jnp.ndarray:
    """Sinusoidal PE table, shape (max_len, d_model), float32 (matches torch)."""
    assert d_model % 2 == 0, "d_model must be even (same assumption as the PyTorch module)"
    position = jnp.arange(0, max_len, dtype=jnp.float32)[:, None]            # (L, 1)
    div_term = jnp.exp(
        jnp.arange(0, d_model, 2, dtype=jnp.float32)
        * -(math.log(10000.0) / d_model)
    )                                                                         # (D/2,)
    angles = position * div_term                                              # (L, D/2)
    pe = jnp.zeros((max_len, d_model), dtype=jnp.float32)
    pe = pe.at[:, 0::2].set(jnp.sin(angles))
    pe = pe.at[:, 1::2].set(jnp.cos(angles))
    return pe


def _vmem_capacity_bytes() -> int:
    """Physical VMEM per TensorCore; conservative (v7x) fallback."""
    try:
        return int(pltpu.get_tpu_info().vmem_capacity_bytes)
    except Exception:
        return 64 << 20


def _snap_to_divisor(rows: int, tr: int, sub: int) -> int:
    """Prefer a row tile (multiple of `sub`) that divides rows exactly, if one
    exists not far below the requested size (avoids a masked final tile)."""
    if rows % tr == 0:
        return tr
    d = (tr // sub) * sub
    floor = max(sub, tr // 2)
    while d >= floor:
        if rows % d == 0:
            return d
        d -= sub
    return tr


def _choose_tiles(rows: int, sd: int, itemsize: int, tile_target: int, sub: int):
    """Pick (TR, TC) with TC lane-aligned (multiple of 128 or full extent),
    TR sublane-aligned (multiple of `sub` or full extent), tile ~= target."""
    row_bytes = sd * itemsize
    if row_bytes <= tile_target:
        # Lane-dense: a whole flattened row (or many) per tile.
        tc = sd
        tr = min(rows, max(1, tile_target // row_bytes))
        if tr < rows:
            tr = min(rows, max(sub, (tr // sub) * sub))
    else:
        # One flattened row exceeds the budget: tile the lane axis too.
        tr = min(rows, sub)
        tc = max(128, (tile_target // max(tr * itemsize, 1)) // 128 * 128)
        tc = min(tc, sd)

    # Megacore: guarantee >= 2 grid steps when there is enough work so the
    # two v7x TensorCores both get a share.
    n_row = pl.cdiv(rows, tr)
    n_col = pl.cdiv(sd, tc)
    if n_row * n_col == 1 and rows >= 2 * sub:
        tr = max(sub, (rows // 2) // sub * sub)

    if tr < rows:
        tr = _snap_to_divisor(rows, tr, sub)
    return tr, tc


def positional_encoding_forward(x: jnp.ndarray, pe_table: jnp.ndarray,
                                dropout_p: float = 0.1, *,
                                min_pallas_bytes: int = 256 * 1024,
                                tile_bytes_override: int | None = None) -> jnp.ndarray:
    """Forward pass of PositionalEncoding (eval mode: dropout = identity).

    x: (..., S, D);  pe_table: (max_len, D) float32 with max_len >= S.
    """
    del dropout_p  # identity in eval mode
    orig_shape = x.shape
    S, D = orig_shape[-2], orig_shape[-1]
    itemsize = jnp.dtype(x.dtype).itemsize

    rows = 1
    for d in orig_shape[:-2]:
        rows *= int(d)
    sd = S * D
    total_bytes = rows * sd * itemsize

    # Tiny inputs: fixed pallas_call overhead dwarfs the work; XLA's fused add
    # is strictly better.
    if total_bytes < min_pallas_bytes:
        pe_b = pe_table[:S, :].reshape((1,) * (x.ndim - 2) + (S, D))
        return (x.astype(jnp.float32) + pe_b).astype(x.dtype)

    x_flat = x.reshape(rows, sd)
    pe_slab = pe_table[:S, :].astype(jnp.float32).reshape(1, sd)  # glue, plain JAX

    # Generation-aware VMEM budgeting (v5e/v6e: 128 MiB, v7x: 64 MiB).
    vmem_cap = _vmem_capacity_bytes()
    budget = (vmem_cap * 3) // 4
    if tile_bytes_override is not None:
        tile_target = int(tile_bytes_override)
    else:
        # 2x double-buffered input tiles + 2x output tiles must fit the budget
        # with headroom; cap at 16 MiB (HBM-roofline already saturated there).
        tile_target = min(16 << 20, max(1 << 20, (budget - (4 << 20)) // 4))

    sub = max(8, 32 // itemsize)  # sublane multiple: 8 f32, 16 bf16, 32 fp8
    TR, TC = _choose_tiles(rows, sd, itemsize, tile_target, sub)
    n_row = pl.cdiv(rows, TR)
    n_col = pl.cdiv(sd, TC)

    tile_bytes = TR * TC * itemsize
    pe_tile_bytes = TC * 4  # f32 PE chunk
    needed = 4 * tile_bytes + 2 * pe_tile_bytes + (2 << 20)
    # Always pass an explicit limit (v5e default scoped limit is only 16 MiB).
    vmem_limit = int(min(max(needed, 8 << 20), (vmem_cap * 9) // 10))

    cost = pl.CostEstimate(
        flops=rows * sd,
        transcendentals=0,
        bytes_accessed=2 * rows * sd * itemsize + sd * 4,
    )

    out_flat = pl.pallas_call(
        _pe_add_kernel,
        out_shape=jax.ShapeDtypeStruct((rows, sd), x.dtype),
        grid_spec=pltpu.PrefetchScalarGridSpec(
            num_scalar_prefetch=0,
            # Column axis OUTER so the PE chunk (block index (0, j)) stays
            # VMEM-resident across the inner row sweep.
            grid=(n_col, n_row),
            in_specs=[
                pl.BlockSpec((TR, TC), lambda j, i: (i, j)),   # x row/col chunk
                pl.BlockSpec((1, TC), lambda j, i: (0, j)),    # PE chunk
            ],
            out_specs=pl.BlockSpec((TR, TC), lambda j, i: (i, j)),
        ),
        compiler_params=pltpu.CompilerParams(
            dimension_semantics=("parallel", "parallel"),
            vmem_limit_bytes=vmem_limit,
        ),
        cost_estimate=cost,
        input_output_aliases={0: 0},   # elementwise add: reuse x's HBM buffer
    )(x_flat, pe_slab)

    return out_flat.reshape(orig_shape)


if __name__ == "__main__":
    # Module-consistent small shapes: batch=2, heads=4, seq=16, d_model=32.
    B, H, S, D = 2, 4, 16, 32
    max_len = 64            # small stand-in for max_len=5000
    dropout_p = 0.1

    key = jax.random.PRNGKey(0)
    x = jax.random.normal(key, (B, H, S, D), dtype=jnp.float32)
    pe_table = build_pe_table(max_len, D)

    # Force the Pallas path even at this small size.
    out = positional_encoding_forward(x, pe_table, dropout_p, min_pallas_bytes=0)
    out = jax.block_until_ready(out)
    ref = x + pe_table[None, None, :S, :]
    assert out.shape == (B, H, S, D)
    assert jnp.allclose(out, ref, atol=1e-6), "mismatch vs reference (case 1)"

    # Exercise the 2-D (column x row) tiling path, incl. a masked partial row
    # tile (rows = 15 not a sublane multiple) via a tiny tile-byte override.
    B2, H2, S2, D2 = 3, 5, 16, 96
    x2 = jax.random.normal(jax.random.PRNGKey(1), (B2, H2, S2, D2), dtype=jnp.float32)
    pe2 = build_pe_table(max_len, D2)
    out2 = positional_encoding_forward(x2, pe2, dropout_p,
                                       min_pallas_bytes=0,
                                       tile_bytes_override=4096)
    out2 = jax.block_until_ready(out2)
    ref2 = x2 + pe2[None, None, :S2, :]
    assert jnp.allclose(out2, ref2, atol=1e-6), "mismatch vs reference (case 2)"

    print("KERNEL_OK")
</pallas_src>

<mosaic_0001>
module attributes {stable_mosaic.version = 11 : i64} {
  func.func @_pe_add_kernel(%arg0: i32, %arg1: i32, %arg2: memref<8x512xf32, #tpu.memory_space<vmem>>, %arg3: memref<1x512xf32, #tpu.memory_space<vmem>>, %arg4: memref<8x512xf32, #tpu.memory_space<vmem>>) attributes {dimension_semantics = [#tpu.dimension_semantics<parallel>, #tpu.dimension_semantics<parallel>], iteration_bounds = array<i64: 1, 1>, scalar_prefetch = 0 : i64, scratch_operands = 0 : i64, tpu.core_type = #tpu.core_type<tc>, window_params = [{transform_indices = @transform_0, window_bounds = array<i64: 8, 512>}, {transform_indices = @transform_1, window_bounds = array<i64: 1, 512>}, {transform_indices = @transform_2, window_bounds = array<i64: 8, 512>}]} {
    %c0 = arith.constant 0 : index
    %c0_0 = arith.constant 0 : index
    %0 = vector.load %arg2[%c0, %c0_0] : memref<8x512xf32, #tpu.memory_space<vmem>>, vector<8x512xf32>
    %c0_1 = arith.constant 0 : index
    %c0_2 = arith.constant 0 : index
    %1 = vector.load %arg3[%c0_1, %c0_2] : memref<1x512xf32, #tpu.memory_space<vmem>>, vector<1x512xf32>
    %2 = vector.broadcast %1 : vector<1x512xf32> to vector<8x512xf32>
    %3 = arith.addf %0, %2 : vector<8x512xf32>
    %c0_3 = arith.constant 0 : index
    %c0_4 = arith.constant 0 : index
    %4 = vector.load %arg4[%c0_3, %c0_4] : memref<8x512xf32, #tpu.memory_space<vmem>>, vector<8x512xf32>
    tpu.vector_store %arg4[%c0_3, %c0_4], %3 {strides = array<i32>} : memref<8x512xf32, #tpu.memory_space<vmem>>, vector<8x512xf32>,
    return
  }
  func.func @transform_0(%arg0: i32, %arg1: i32) -> (i32, i32) {
    %c0_i32 = arith.constant 0 : i32
    return %arg1, %arg0 : i32, i32
  }
  func.func @transform_1(%arg0: i32, %arg1: i32) -> (i32, i32) {
    %c0_i32 = arith.constant 0 : i32
    %c0_i32_0 = arith.constant 0 : i32
    return %c0_i32, %arg0 : i32, i32
  }
  func.func @transform_2(%arg0: i32, %arg1: i32) -> (i32, i32) {
    %c0_i32 = arith.constant 0 : i32
    return %arg1, %arg0 : i32, i32
  }
}

</mosaic_0001>

<bundles_post_ra>
// kernel: tpu_custom_call.1
= control target key start
LH: loop header
LB: loop body
LE: loop exit
PB: predicated region body
PF: predicated region fallthrough
CT: control target
= control target key end

     0   :  { %7 = vsyncpa [#allocation3], 0  ;;  %s145_s0 = inlined_call_operand.hbm [shape: f32[8,512], index: 0, kind: input, shape index: {}, may-alias: {0,2}]   ;;  %s146_s1 = inlined_call_operand.vmem [shape: f32[1,512], index: 1, kind: input, shape index: {}]   ;;  %s147_s2 = inlined_call_operand.hbm [shape: f32[8,512], index: 2, kind: output, shape index: {}, may-alias: {0,2}]  }
   0x1   :  { %8 = vsyncpa [#allocation4], 0  ;;  %s119_s9 = smov [#allocation2]  }
   0x2   :  { %s15_s10 = sshll.u32 %s119_s9, 4  ;;  %s16_s10 = int_to_ptr.vmem [resolvable:$true] %s15_s10 }
   0x3   :  { %s83_s11 = scalar_lea.vmem %s16_s10, 512  ;;  %p88_p1 = scmp.lt.s32.totalorder %s16_s10, %s16_s10 }
   0x4   :  { %p84_p0 = scmp.ne.s32.totalorder %s16_s10, %s83_s11  ;;  %p89_p2 = scmp.lt.s32.totalorder %s83_s11, %s83_s11 }
   0x6   :  { %p90_p3 = por %p89_p2, %p88_p1 }
   0x8   :  { %p91_p4 = pnand %p90_p3, %p84_p0 }
   0xa   :  { %94 = shalt.err (!%p91_p4)
}
   0xb   :  { %18 = dma.hbm_to_vmem [thread:$0]  %s145_s0, 512, %s16_s10, [#allocation3]  }
   0xc   :  { %115 = dma.done.wait [#allocation3], 512  }
   0xd   :  { %116 = vsyncadd [#allocation3], 4294966784  ;;  %v30_v0 = vlaneseq  ;;  %v24_v6 = vld [vmem:[#allocation2] sm:$0xff]  ;;  %v25_v8 = vld [vmem:[#allocation2 + $0x8] sm:$0xff]  ;;  %s120_s16 = smov [#allocation5]  }
   0xe   :  { %v28_v7 = vld [vmem:[%s146_s1] sm:$0xf]  ;;  %s64_s17 = sshll.u32 %s120_s16, 4  ;;  %v26_v11 = vld [vmem:[#allocation2 + $0x10] sm:$0xff]  ;;  %v27_v13 = vld [vmem:[#allocation2 + $0x18] sm:$0xff]  ;;  %s65_s17 = int_to_ptr.vmem [resolvable:$true] %s64_s17 }
   0xf   :  { %v31_v1 = vshrl.u32 %v30_v0, 7  ;;  %s95_s0 = scalar_lea.vmem %s65_s17, 512  ;;  %p100_p6 = scmp.lt.s32.totalorder %s65_s17, %s65_s17 }
  0x10   :  { %p96_p5 = scmp.ne.s32.totalorder %s65_s17, %s95_s0  ;;  %p101_p7 = scmp.lt.s32.totalorder %s95_s0, %s95_s0 }
  0x11   :  { %v32_v2 = vsub.s32 0, %v31_v1  ;;  %v36_v3 = vsub.s32 1, %v31_v1  ;;  %v40_v4 = vsub.s32 2, %v31_v1  ;;  %v44_v5 = vsub.s32 3, %v31_v1 }
  0x12   :  { %p102_p8 = por %p101_p7, %p100_p6 }
  0x13   :  { %v33_v9 = vrot.slane %v28_v7, %v32_v2  ;;  %v37_v10 = vrot.slane %v28_v7, %v36_v3  ;;  %v41_v12 = vrot.slane %v28_v7, %v40_v4  ;;  %v45_v14 = vrot.slane %v28_v7, %v44_v5 }
  0x14   :  { %p103_p9 = pnand %p102_p8, %p96_p5 }
  0x15   :  { %v50_v15 = vadd.f32 %v33_v9, %v24_v6  ;;  %v51_v16 = vadd.f32 %v37_v10, %v25_v8  ;;  %v52_v17 = vadd.f32 %v41_v12, %v26_v11  ;;  %v53_v18 = vadd.f32 %v45_v14, %v27_v13 }
  0x17   :  { %54 = vst [vmem:[#allocation5] sm:$0xff] %v50_v15  ;;  %55 = vst [vmem:[#allocation5 + $0x8] sm:$0xff] %v51_v16 }
  0x18   :  { %56 = vst [vmem:[#allocation5 + $0x10] sm:$0xff] %v52_v17  ;;  %57 = vst [vmem:[#allocation5 + $0x18] sm:$0xff] %v53_v18 }
  0x19   :  { %106 = shalt.err (!%p103_p9)
}
  0x1a   :  { %67 = dma.vmem_to_hbm [thread:$0]  %s65_s17, 512, %s147_s2, [#allocation4]  }
  0x1b   :  { %117 = dma.done.wait [#allocation4], 512  }
  0x1c   :  { %118 = vsyncadd [#allocation4], 4294966784 }
  0x1d   :  { %71 = vsyncpa [#allocation3], 1 }
  0x1e   :  { %72 = vsyncpa [#allocation4], 1 }

</bundles_post_ra>
